<compile_context>
chip_gen: v5e
topology: v5e:2x2
jax: 0.10.0
libtpu: 0.0.40
codegen_flags: <defaults>
</compile_context>

<pallas_src>
import jax
import jax.numpy as jnp
from jax.experimental import pallas as pl
from jax.experimental.pallas import tpu as pltpu


def _round_up(n, m):
    return (n + m - 1) // m * m


def mlp_kernel(x_ref,
               w1_ref, b1_ref,
               w2_ref, b2_ref,
               w3_ref, b3_ref,
               w4_ref, b4_ref,
               w5_ref, b5_ref,
               o_ref):
    """Fused 5-layer MLP on one (tb, 131) batch tile.

    bf16 operands on the MXU, f32 accumulation, f32 bias-add + ReLU.
    Weights/biases are full-array VMEM-resident blocks; the output block is
    the true 41-column width (masked store, hidden under DMA in this
    memory-bound regime).
    """
    def dense(h, w_ref, b_ref, relu):
        y = jnp.dot(h.astype(jnp.bfloat16), w_ref[...],
                    preferred_element_type=jnp.float32) + b_ref[...]
        return jnp.maximum(y, 0.0) if relu else y

    h = x_ref[...]                       # (tb, 131) f32
    h = dense(h, w1_ref, b1_ref, True)   # (tb, 256) f32
    h = dense(h, w2_ref, b2_ref, True)   # (tb, 128)
    h = dense(h, w3_ref, b3_ref, True)   # (tb, 64)
    h = dense(h, w4_ref, b4_ref, True)   # (tb, 32)
    o_ref[...] = dense(h, w5_ref, b5_ref, False).astype(o_ref.dtype)   # (tb, 41)


def prepare_params(params):
    """Weights -> bf16 (halves the weight HBM read, which dominates for tiny
    serving batches); biases stay f32.  No shape padding: each array is passed
    to the kernel as a full-array block."""
    flat = []
    for w, b in params:
        flat.append(w.astype(jnp.bfloat16))
        flat.append(b.astype(jnp.float32))
    return tuple(flat)


def disease_predictor_forward(x, params, *, block_rows=2048):
    """x: (batch, 131) f32; params: 5 (W, b) pairs, W in (in, out) layout, b (1, out)."""
    x = x.astype(jnp.float32)
    batch, in_features = x.shape
    flat_params = prepare_params(params)
    num_classes = flat_params[-1].shape[-1]

    # Batch tiling: size tiles to the actual batch (not always block_rows) so
    # the last tile has little dead work; force >= 2 grid steps for big batches
    # so v7x's two TensorCores both participate.
    num_tiles = max(1, pl.cdiv(batch, block_rows))
    if num_tiles == 1 and batch >= 256:
        num_tiles = 2   # TODO(synk): gate on chip generation via pltpu.get_tpu_info
    tb = _round_up(pl.cdiv(batch, num_tiles), 8)
    padded_batch = tb * num_tiles

    # Only a (rare, < tb rows) batch remainder is ever padded; columns are
    # never padded and x is never pre-cast, so there is no wrapper-side HBM
    # pre-pass for already-aligned batches.
    xp = x if padded_batch == batch else jnp.pad(x, ((0, padded_batch - batch), (0, 0)))

    x_spec = pl.BlockSpec((tb, in_features), lambda i: (i, 0))
    # Constant index_maps -> weights/biases are DMA'd once and stay VMEM-resident.
    # TODO(synk): pipeline_mode=pl.Buffered(1) on these (and packing the 10 arrays
    # into 1-2 buffers) would trim VMEM + DMA-descriptor overhead on the
    # tiny-batch serving path.
    param_specs = [pl.BlockSpec(p.shape, lambda i: (0, 0)) for p in flat_params]
    out_spec = pl.BlockSpec((tb, num_classes), lambda i: (i, 0))

    out = pl.pallas_call(
        mlp_kernel,
        out_shape=jax.ShapeDtypeStruct((padded_batch, num_classes), jnp.float32),
        grid=(num_tiles,),
        in_specs=[x_spec] + param_specs,
        out_specs=out_spec,
        compiler_params=pltpu.CompilerParams(
            dimension_semantics=("parallel",),     # v7x: 2 TCs split the batch grid
            vmem_limit_bytes=32 * 1024 * 1024,     # tb=2048 tiles fit; raises v5e's 16 MiB default
        ),
    )(xp, *flat_params)

    # Columns are already exactly num_classes; only padded rows need slicing.
    return out if padded_batch == batch else out[:batch]


def init_linear(key, in_features, out_features):
    # PyTorch nn.Linear default init: U(-1/sqrt(in), 1/sqrt(in)) for W and b.
    kw, kb = jax.random.split(key)
    bound = 1.0 / jnp.sqrt(jnp.float32(in_features))
    w = jax.random.uniform(kw, (in_features, out_features), jnp.float32,
                           minval=-bound, maxval=bound)
    b = jax.random.uniform(kb, (1, out_features), jnp.float32,
                           minval=-bound, maxval=bound)
    return w, b


def reference_forward(x, params):
    """Pure-JAX reference emulating the kernel's numerics (bf16 MXU operands,
    f32 accumulation, f32 bias + ReLU).  Deviation from the strict-f32 PyTorch
    forward is at the ~1e-2 logit level."""
    def dense(h, w, b, relu):
        y = jnp.dot(h.astype(jnp.bfloat16), w.astype(jnp.bfloat16),
                    preferred_element_type=jnp.float32) + b
        return jnp.maximum(y, 0.0) if relu else y

    (w1, b1), (w2, b2), (w3, b3), (w4, b4), (w5, b5) = params
    h = dense(x, w1, b1, True)
    h = dense(h, w2, b2, True)
    h = dense(h, w3, b3, True)
    h = dense(h, w4, b4, True)
    return dense(h, w5, b5, False)


if __name__ == "__main__":
    input_size = 131
    num_classes = 41
    batch = 8

    key = jax.random.PRNGKey(0)
    kx, k1, k2, k3, k4, k5 = jax.random.split(key, 6)

    x = jax.random.normal(kx, (batch, input_size), jnp.float32)
    params = (
        init_linear(k1, input_size, 256),
        init_linear(k2, 256, 128),
        init_linear(k3, 128, 64),
        init_linear(k4, 64, 32),
        init_linear(k5, 32, num_classes),
    )

    out = disease_predictor_forward(x, params)
    out = jax.block_until_ready(out)

    ref = reference_forward(x, params)
    assert out.shape == (batch, num_classes)
    assert jnp.allclose(out, ref, atol=1e-2, rtol=1e-2), "mismatch vs JAX reference"

    print("KERNEL_OK")
</pallas_src>

<mosaic_0001>
module attributes {stable_mosaic.version = 11 : i64} {
  func.func @mlp_kernel(%arg0: i32, %arg1: memref<8x131xf32, #tpu.memory_space<vmem>>, %arg2: memref<131x256xbf16, #tpu.memory_space<vmem>>, %arg3: memref<1x256xf32, #tpu.memory_space<vmem>>, %arg4: memref<256x128xbf16, #tpu.memory_space<vmem>>, %arg5: memref<1x128xf32, #tpu.memory_space<vmem>>, %arg6: memref<128x64xbf16, #tpu.memory_space<vmem>>, %arg7: memref<1x64xf32, #tpu.memory_space<vmem>>, %arg8: memref<64x32xbf16, #tpu.memory_space<vmem>>, %arg9: memref<1x32xf32, #tpu.memory_space<vmem>>, %arg10: memref<32x41xbf16, #tpu.memory_space<vmem>>, %arg11: memref<1x41xf32, #tpu.memory_space<vmem>>, %arg12: memref<8x41xf32, #tpu.memory_space<vmem>>) attributes {dimension_semantics = [#tpu.dimension_semantics<parallel>], iteration_bounds = array<i64: 1>, scalar_prefetch = 0 : i64, scratch_operands = 0 : i64, tpu.core_type = #tpu.core_type<tc>, window_params = [{transform_indices = @transform_0, window_bounds = array<i64: 8, 131>}, {pipeline_mode = #tpu.pipeline_mode<synchronous>, transform_indices = @transform_1, window_bounds = array<i64: 131, 256>}, {pipeline_mode = #tpu.pipeline_mode<synchronous>, transform_indices = @transform_2, window_bounds = array<i64: 1, 256>}, {pipeline_mode = #tpu.pipeline_mode<synchronous>, transform_indices = @transform_3, window_bounds = array<i64: 256, 128>}, {pipeline_mode = #tpu.pipeline_mode<synchronous>, transform_indices = @transform_4, window_bounds = array<i64: 1, 128>}, {pipeline_mode = #tpu.pipeline_mode<synchronous>, transform_indices = @transform_5, window_bounds = array<i64: 128, 64>}, {pipeline_mode = #tpu.pipeline_mode<synchronous>, transform_indices = @transform_6, window_bounds = array<i64: 1, 64>}, {pipeline_mode = #tpu.pipeline_mode<synchronous>, transform_indices = @transform_7, window_bounds = array<i64: 64, 32>}, {pipeline_mode = #tpu.pipeline_mode<synchronous>, transform_indices = @transform_8, window_bounds = array<i64: 1, 32>}, {pipeline_mode = #tpu.pipeline_mode<synchronous>, transform_indices = @transform_9, window_bounds = array<i64: 32, 41>}, {pipeline_mode = #tpu.pipeline_mode<synchronous>, transform_indices = @transform_10, window_bounds = array<i64: 1, 41>}, {transform_indices = @transform_11, window_bounds = array<i64: 8, 41>}]} {
    %c0 = arith.constant 0 : index
    %c0_0 = arith.constant 0 : index
    %0 = vector.load %arg1[%c0, %c0_0] : memref<8x131xf32, #tpu.memory_space<vmem>>, vector<8x131xf32>
    %1 = arith.truncf %0 : vector<8x131xf32> to vector<8x131xbf16>
    %c0_1 = arith.constant 0 : index
    %c0_2 = arith.constant 0 : index
    %2 = vector.load %arg2[%c0_1, %c0_2] : memref<131x256xbf16, #tpu.memory_space<vmem>>, vector<131x256xbf16>
    %cst = arith.constant dense<0.000000e+00> : vector<8x256xf32>
    %3 = tpu.matmul %1, %2, %cst {dimension_numbers = #tpu.dot_dimension_numbers<[1], [0], [0], [1], [0, 0, 1, 1], [], []>} : vector<8x131xbf16>, vector<131x256xbf16>, vector<8x256xf32> -> vector<8x256xf32>
    %c0_3 = arith.constant 0 : index
    %c0_4 = arith.constant 0 : index
    %4 = vector.load %arg3[%c0_3, %c0_4] : memref<1x256xf32, #tpu.memory_space<vmem>>, vector<1x256xf32>
    %5 = vector.broadcast %4 : vector<1x256xf32> to vector<8x256xf32>
    %6 = arith.addf %3, %5 : vector<8x256xf32>
    %cst_5 = arith.constant 0.000000e+00 : f32
    %7 = vector.broadcast %cst_5 : f32 to vector<8x256xf32>
    %8 = arith.maximumf %6, %7 : vector<8x256xf32>
    %9 = arith.truncf %8 : vector<8x256xf32> to vector<8x256xbf16>
    %c0_6 = arith.constant 0 : index
    %c0_7 = arith.constant 0 : index
    %10 = vector.load %arg4[%c0_6, %c0_7] : memref<256x128xbf16, #tpu.memory_space<vmem>>, vector<256x128xbf16>
    %cst_8 = arith.constant dense<0.000000e+00> : vector<8x128xf32>
    %11 = tpu.matmul %9, %10, %cst_8 {dimension_numbers = #tpu.dot_dimension_numbers<[1], [0], [0], [1], [0, 0, 1, 1], [], []>} : vector<8x256xbf16>, vector<256x128xbf16>, vector<8x128xf32> -> vector<8x128xf32>
    %c0_9 = arith.constant 0 : index
    %c0_10 = arith.constant 0 : index
    %12 = vector.load %arg5[%c0_9, %c0_10] : memref<1x128xf32, #tpu.memory_space<vmem>>, vector<1x128xf32>
    %13 = vector.broadcast %12 : vector<1x128xf32> to vector<8x128xf32>
    %14 = arith.addf %11, %13 : vector<8x128xf32>
    %cst_11 = arith.constant 0.000000e+00 : f32
    %15 = vector.broadcast %cst_11 : f32 to vector<8x128xf32>
    %16 = arith.maximumf %14, %15 : vector<8x128xf32>
    %17 = arith.truncf %16 : vector<8x128xf32> to vector<8x128xbf16>
    %c0_12 = arith.constant 0 : index
    %c0_13 = arith.constant 0 : index
    %18 = vector.load %arg6[%c0_12, %c0_13] : memref<128x64xbf16, #tpu.memory_space<vmem>>, vector<128x64xbf16>
    %cst_14 = arith.constant dense<0.000000e+00> : vector<8x64xf32>
    %19 = tpu.matmul %17, %18, %cst_14 {dimension_numbers = #tpu.dot_dimension_numbers<[1], [0], [0], [1], [0, 0, 1, 1], [], []>} : vector<8x128xbf16>, vector<128x64xbf16>, vector<8x64xf32> -> vector<8x64xf32>
    %c0_15 = arith.constant 0 : index
    %c0_16 = arith.constant 0 : index
    %20 = vector.load %arg7[%c0_15, %c0_16] : memref<1x64xf32, #tpu.memory_space<vmem>>, vector<1x64xf32>
    %21 = vector.broadcast %20 : vector<1x64xf32> to vector<8x64xf32>
    %22 = arith.addf %19, %21 : vector<8x64xf32>
    %cst_17 = arith.constant 0.000000e+00 : f32
    %23 = vector.broadcast %cst_17 : f32 to vector<8x64xf32>
    %24 = arith.maximumf %22, %23 : vector<8x64xf32>
    %25 = arith.truncf %24 : vector<8x64xf32> to vector<8x64xbf16>
    %c0_18 = arith.constant 0 : index
    %c0_19 = arith.constant 0 : index
    %26 = vector.load %arg8[%c0_18, %c0_19] : memref<64x32xbf16, #tpu.memory_space<vmem>>, vector<64x32xbf16>
    %cst_20 = arith.constant dense<0.000000e+00> : vector<8x32xf32>
    %27 = tpu.matmul %25, %26, %cst_20 {dimension_numbers = #tpu.dot_dimension_numbers<[1], [0], [0], [1], [0, 0, 1, 1], [], []>} : vector<8x64xbf16>, vector<64x32xbf16>, vector<8x32xf32> -> vector<8x32xf32>
    %c0_21 = arith.constant 0 : index
    %c0_22 = arith.constant 0 : index
    %28 = vector.load %arg9[%c0_21, %c0_22] : memref<1x32xf32, #tpu.memory_space<vmem>>, vector<1x32xf32>
    %29 = vector.broadcast %28 : vector<1x32xf32> to vector<8x32xf32>
    %30 = arith.addf %27, %29 : vector<8x32xf32>
    %cst_23 = arith.constant 0.000000e+00 : f32
    %31 = vector.broadcast %cst_23 : f32 to vector<8x32xf32>
    %32 = arith.maximumf %30, %31 : vector<8x32xf32>
    %33 = arith.truncf %32 : vector<8x32xf32> to vector<8x32xbf16>
    %c0_24 = arith.constant 0 : index
    %c0_25 = arith.constant 0 : index
    %34 = vector.load %arg10[%c0_24, %c0_25] : memref<32x41xbf16, #tpu.memory_space<vmem>>, vector<32x41xbf16>
    %cst_26 = arith.constant dense<0.000000e+00> : vector<8x41xf32>
    %35 = tpu.matmul %33, %34, %cst_26 {dimension_numbers = #tpu.dot_dimension_numbers<[1], [0], [0], [1], [0, 0, 1, 1], [], []>} : vector<8x32xbf16>, vector<32x41xbf16>, vector<8x41xf32> -> vector<8x41xf32>
    %c0_27 = arith.constant 0 : index
    %c0_28 = arith.constant 0 : index
    %36 = vector.load %arg11[%c0_27, %c0_28] : memref<1x41xf32, #tpu.memory_space<vmem>>, vector<1x41xf32>
    %37 = vector.broadcast %36 : vector<1x41xf32> to vector<8x41xf32>
    %38 = arith.addf %35, %37 : vector<8x41xf32>
    %c0_29 = arith.constant 0 : index
    %c0_30 = arith.constant 0 : index
    %39 = vector.load %arg12[%c0_29, %c0_30] : memref<8x41xf32, #tpu.memory_space<vmem>>, vector<8x41xf32>
    tpu.vector_store %arg12[%c0_29, %c0_30], %38 {strides = array<i32>} : memref<8x41xf32, #tpu.memory_space<vmem>>, vector<8x41xf32>,
    return
  }
  func.func @transform_0(%arg0: i32) -> (i32, i32) {
    %c0_i32 = arith.constant 0 : i32
    %c0_i32_0 = arith.constant 0 : i32
    return %arg0, %c0_i32 : i32, i32
  }
  func.func @transform_1(%arg0: i32) -> (i32, i32) {
    %c0_i32 = arith.constant 0 : i32
    %c0_i32_0 = arith.constant 0 : i32
    %c0_i32_1 = arith.constant 0 : i32
    return %c0_i32, %c0_i32_0 : i32, i32
  }
  func.func @transform_2(%arg0: i32) -> (i32, i32) {
    %c0_i32 = arith.constant 0 : i32
    %c0_i32_0 = arith.constant 0 : i32
    %c0_i32_1 = arith.constant 0 : i32
    return %c0_i32, %c0_i32_0 : i32, i32
  }
  func.func @transform_3(%arg0: i32) -> (i32, i32) {
    %c0_i32 = arith.constant 0 : i32
    %c0_i32_0 = arith.constant 0 : i32
    %c0_i32_1 = arith.constant 0 : i32
    return %c0_i32, %c0_i32_0 : i32, i32
  }
  func.func @transform_4(%arg0: i32) -> (i32, i32) {
    %c0_i32 = arith.constant 0 : i32
    %c0_i32_0 = arith.constant 0 : i32
    %c0_i32_1 = arith.constant 0 : i32
    return %c0_i32, %c0_i32_0 : i32, i32
  }
  func.func @transform_5(%arg0: i32) -> (i32, i32) {
    %c0_i32 = arith.constant 0 : i32
    %c0_i32_0 = arith.constant 0 : i32
    %c0_i32_1 = arith.constant 0 : i32
    return %c0_i32, %c0_i32_0 : i32, i32
  }
  func.func @transform_6(%arg0: i32) -> (i32, i32) {
    %c0_i32 = arith.constant 0 : i32
    %c0_i32_0 = arith.constant 0 : i32
    %c0_i32_1 = arith.constant 0 : i32
    return %c0_i32, %c0_i32_0 : i32, i32
  }
  func.func @transform_7(%arg0: i32) -> (i32, i32) {
    %c0_i32 = arith.constant 0 : i32
    %c0_i32_0 = arith.constant 0 : i32
    %c0_i32_1 = arith.constant 0 : i32
    return %c0_i32, %c0_i32_0 : i32, i32
  }
  func.func @transform_8(%arg0: i32) -> (i32, i32) {
    %c0_i32 = arith.constant 0 : i32
    %c0_i32_0 = arith.constant 0 : i32
    %c0_i32_1 = arith.constant 0 : i32
    return %c0_i32, %c0_i32_0 : i32, i32
  }
  func.func @transform_9(%arg0: i32) -> (i32, i32) {
    %c0_i32 = arith.constant 0 : i32
    %c0_i32_0 = arith.constant 0 : i32
    %c0_i32_1 = arith.constant 0 : i32
    return %c0_i32, %c0_i32_0 : i32, i32
  }
  func.func @transform_10(%arg0: i32) -> (i32, i32) {
    %c0_i32 = arith.constant 0 : i32
    %c0_i32_0 = arith.constant 0 : i32
    %c0_i32_1 = arith.constant 0 : i32
    return %c0_i32, %c0_i32_0 : i32, i32
  }
  func.func @transform_11(%arg0: i32) -> (i32, i32) {
    %c0_i32 = arith.constant 0 : i32
    %c0_i32_0 = arith.constant 0 : i32
    return %arg0, %c0_i32 : i32, i32
  }
}

</mosaic_0001>

<bundles_post_ra>
// kernel: tpu_custom_call.1
= control target key start
LH: loop header
LB: loop body
LE: loop exit
PB: predicated region body
PF: predicated region fallthrough
CT: control target
= control target key end

     0   :  { %16 = vsyncpa [#allocation3], 0  ;;  %s1075_s0 = inlined_call_operand.vmem [shape: f32[8,131], index: 0, kind: input, shape index: {}]   ;;  %s1076_s1 = inlined_call_operand.hbm [shape: bf16[131,256], index: 1, kind: input, shape index: {}]   ;;  %s1077_s2 = inlined_call_operand.vmem [shape: f32[1,256], index: 2, kind: input, shape index: {}]   ;;  %s1078_s3 = inlined_call_operand.hbm [shape: bf16[256,128], index: 3, kind: input, shape index: {}]   ;;  %s1079_s4 = inlined_call_operand.vmem [shape: f32[1,128], index: 4, kind: input, shape index: {}]   ;;  %s1080_s5 = inlined_call_operand.vmem [shape: bf16[128,64], index: 5, kind: input, shape index: {}]   ;;  %s1081_s6 = inlined_call_operand.vmem [shape: f32[1,64], index: 6, kind: input, shape index: {}]   ;;  %s1082_s7 = inlined_call_operand.vmem [shape: bf16[64,32], index: 7, kind: input, shape index: {}]   ;;  %s1083_s8 = inlined_call_operand.vmem [shape: f32[1,32], index: 8, kind: input, shape index: {}]   ;;  %s1084_s9 = inlined_call_operand.vmem [shape: bf16[32,41], index: 9, kind: input, shape index: {}]   ;;  %s1085_s10 = inlined_call_operand.vmem [shape: f32[1,41], index: 10, kind: input, shape index: {}]   ;;  %s1086_s11 = inlined_call_operand.hbm [shape: f32[8,41], index: 11, kind: output, shape index: {}]  }
   0x1   :  { %17 = vsyncpa [#allocation6], 0 }
   0x2   :  { %18 = vsyncpa [#allocation4], 0  ;;  %s25_s19 = sshll.u32 %s1076_s1, 4  ;;  %s933_s20 = smov [#allocation2]   ;;  %s26_s19 = int_to_ptr.hbm [resolvable:$true] %s25_s19 }
   0x3   :  { %s27_s21 = sshll.u32 %s933_s20, 4  ;;  %s40_s24 = sshll.u32 %s1078_s3, 4  ;;  %s28_s21 = int_to_ptr.vmem [resolvable:$true] %s27_s21  ;;  %s41_s24 = int_to_ptr.hbm [resolvable:$true] %s40_s24 }
   0x4   :  { %s934_s25 = smov 128   ;;  %s935_s26 = smov 8  }
   0x5   :  { %33 = dma.hbm_to_vmem [thread:$0]  %s26_s19, 2176, %s28_s21, [#allocation3], %s934_s25, %s934_s25, %s935_s26  }
   0x6   :  { %s936_s27 = smov [#allocation5]   ;;  %s937_s29 = smov 64  }
   0x7   :  { %s42_s28 = sshll.u32 %s936_s27, 4  ;;  %s938_s30 = smov 4   ;;  %s43_s28 = int_to_ptr.vmem [resolvable:$true] %s42_s28 }
   0x8   :  { %48 = dma.hbm_to_vmem [thread:$0]  %s41_s24, 2048, %s43_s28, [#allocation6], %s937_s29, %s937_s29, %s938_s30  }
   0x9   :  { %927 = dma.done.wait [#allocation3], 2176  }
   0xa   :  { %928 = vsyncadd [#allocation3], 4294965120 }
   0xb   :  { %929 = dma.done.wait [#allocation6], 2048  }
   0xc   :  { %930 = vsyncadd [#allocation6], 4294965248  ;;  %v811_v0 = vld [vmem:[#allocation2 + $0x74] sm:$0xf]  ;;  %v669_v1 = vld [vmem:[#allocation2 + $0x78] sm:$0xf0] }
   0xd   :  { %v667_v2 = vld [vmem:[#allocation2 + $0x70] sm:$0xf]  ;;  %v672_v3 = vor.u32 %v811_v0, %v669_v1  ;;  %v812_v4 = vld [vmem:[#allocation2 + $0x74] sm:$0xf0]  ;;  %v809_v5 = vld [vmem:[#allocation2 + $0x64] sm:$0xf] }
   0xe   :  { %v661_v6 = vld [vmem:[#allocation2 + $0x68] sm:$0xf0]  ;;  %v668_v7 = vor.u32 %v812_v4, %v667_v2  ;;  %v659_v8 = vld [vmem:[#allocation2 + $0x60] sm:$0xf]  ;;  %v810_v9 = vld [vmem:[#allocation2 + $0x64] sm:$0xf0] }
   0xf   :  { %224 = vmatpush.bf16.msra.mxu2 %v672_v3  ;;  %v664_v10 = vor.u32 %v809_v5, %v661_v6  ;;  %v660_v11 = vor.u32 %v810_v9, %v659_v8  ;;  %v807_v12 = vld [vmem:[#allocation2 + $0x54] sm:$0xf]  ;;  %v653_v13 = vld [vmem:[#allocation2 + $0x58] sm:$0xf0]  ;;  %vm188_vm0 = vcmask 1040384   ;;  %vm189_vm1 = vcmask 1041408  }
  0x10   :  { %198 = vmatpush.bf16.msra.mxu0 %v668_v7  ;;  %v651_v14 = vld [vmem:[#allocation2 + $0x50] sm:$0xf]  ;;  %v808_v15 = vld [vmem:[#allocation2 + $0x54] sm:$0xf0]  ;;  %v656_v16 = vor.u32 %v807_v12, %v653_v13  ;;  %v939_v17 = vmov 65535   ;;  %v73_v30 = vld [vmem:[%s1075_s0 + $0x8] sm:$0xff] }
  0x11   :  { %v190_v18 = vsel %vm188_vm0, 4294967295, %v939_v17  ;;  %v652_v19 = vor.u32 %v808_v15, %v651_v14  ;;  %v805_v20 = vld [vmem:[#allocation2 + $0x44] sm:$0xf]  ;;  %v645_v21 = vld [vmem:[#allocation2 + $0x48] sm:$0xf0]  ;;  %v75_v41 = vpack.c.bf16 %v73_v30, %v73_v30  ;;  %vm184_vm2 = vcmask 23552  }
  0x12   :  { %v92_v22 = vld [vmem:[#allocation2 + $0x80] sm:$0x33]  ;;  %v806_v24 = vld [vmem:[#allocation2 + $0x44] sm:$0xf0]  ;;  %v191_v27 = vsel %vm189_vm1, %v190_v18, 0  ;;  %v648_v28 = vor.u32 %v805_v20, %v645_v21  ;;  %v819_v48 = vld [vmem:[#allocation5 + $0x30] sm:$0xff] }
  0x13   :  { %225 = vmatpush.bf16.msra.mxu2 %v664_v10  ;;  %v643_v23 = vld [vmem:[#allocation2 + $0x40] sm:$0xf]  ;;  %v149_v25 = vunpack.c.h.b16 %v92_v22  ;;  %v148_v26 = vunpack.c.l.b16 %v92_v22  ;;  %v803_v33 = vld [vmem:[#allocation2 + $0x34] sm:$0xf]  ;;  %v637_v34 = vld [vmem:[#allocation2 + $0x38] sm:$0xf0] }
  0x14   :  { %199 = vmatpush.bf16.msra.mxu0 %v660_v11  ;;  %v644_v32 = vor.u32 %v806_v24, %v643_v23  ;;  %v635_v35 = vld [vmem:[#allocation2 + $0x30] sm:$0xf]  ;;  %v804_v36 = vld [vmem:[#allocation2 + $0x34] sm:$0xf0]  ;;  %v820_v39 = vld [vmem:[#allocation5 + $0x38] sm:$0xff]  ;;  %v640_v42 = vor.u32 %v803_v33, %v637_v34  ;;  %vm533_vm3 = vcmask 523264  }
  0x15   :  { %v167_v29 = vpack.c.b16 %v149_v25, %v149_v25  ;;  %v166_v31 = vpack.c.b16 %v148_v26, %v148_v26  ;;  %v828_v40 = vld [vmem:[#allocation5 + $0x78] sm:$0xff]  ;;  %v636_v43 = vor.u32 %v804_v36, %v635_v35  ;;  %v629_v45 = vld [vmem:[#allocation2 + $0x28] sm:$0xf0]  ;;  %v802_v47 = vld [vmem:[#allocation2 + $0x24] sm:$0xf0]  ;;  %vm572_vm4 = vcmask 261120  }
  0x16   :  { %v801_v44 = vld [vmem:[#allocation2 + $0x24] sm:$0xf]  ;;  %v627_v46 = vld [vmem:[#allocation2 + $0x20] sm:$0xf]  ;;  %v827_v49 = vld [vmem:[#allocation5 + $0x70] sm:$0xff]  ;;  %s940_s23 = smov [#allocation7]  }
  0x17   :  { %226 = vmatpush.bf16.msra.mxu2 %v656_v16  ;;  %v196_v37 = vand.u32 %v191_v27, %v167_v29  ;;  %v193_v38 = vand.u32 %v191_v27, %v166_v31  ;;  %v632_v50 = vor.u32 %v801_v44, %v629_v45  ;;  %v628_v51 = vor.u32 %v802_v47, %v627_v46  ;;  %v799_v52 = vld [vmem:[#allocation2 + $0x14] sm:$0xf]  ;;  %v621_v53 = vld [vmem:[#allocation2 + $0x18] sm:$0xf0]  ;;  %v619_v54 = vld [vmem:[#allocation2 + $0x10] sm:$0xf] }
  0x18   :  { %200 = vmatpush.bf16.msra.mxu0 %v652_v19  ;;  %v800_v55 = vld [vmem:[#allocation2 + $0x14] sm:$0xf0]  ;;  %v818_v56 = vld [vmem:[#allocation5 + $0x28] sm:$0xff]  ;;  %v624_v58 = vor.u32 %v799_v52, %v621_v53  ;;  %v797_v60 = vld [vmem:[#allocation2 + $0x4] sm:$0xf]  ;;  %s598_s26 = sshll.u32 %s1086_s11, 4  ;;  %s599_s26 = int_to_ptr.hbm [resolvable:$true] %s598_s26 }
  0x19   :  { %244 = vmatpush.bf16.msra.mxu3 %v196_v37  ;;  %218 = vmatpush.bf16.msra.mxu1 %v193_v38  ;;  %v826_v57 = vld [vmem:[#allocation5 + $0x68] sm:$0xff]  ;;  %v620_v59 = vor.u32 %v800_v55, %v619_v54  ;;  %v613_v61 = vld [vmem:[#allocation2 + $0x8] sm:$0xf0]  ;;  %v611_v62 = vld [vmem:[#allocation2] sm:$0xf]  ;;  %vm589_vm5 = vcmask 334848  }
  0x1a   :  { %v798_v63 = vld [vmem:[#allocation2 + $0x4] sm:$0xf0]  ;;  %v616_v2 = vor.u32 %v797_v60, %v613_v61  ;;  %v72_v3 = vld [vmem:[%s1075_s0] sm:$0xff]  ;;  %v815_v7 = vld [vmem:[#allocation5 + $0x10] sm:$0xff] }
  0x1b   :  { %227 = vmatpush.bf16.msra.mxu2 %v648_v28  ;;  %v817_v0 = vld [vmem:[#allocation5 + $0x20] sm:$0xff]  ;;  %v612_v4 = vor.u32 %v798_v63, %v611_v62  ;;  %v816_v5 = vld [vmem:[#allocation5 + $0x18] sm:$0xff]  ;;  %v74_v6 = vpack.c.bf16 %v72_v3, %v72_v3  ;;  %v814_v9 = vld [vmem:[#allocation5 + $0x8] sm:$0xff] }
  0x1c   :  { %201 = vmatpush.bf16.msra.mxu0 %v644_v32  ;;  %674 = vmatmul.msk.bf16.vlgmr.msra.gmra.mxu3 %vm184_vm2, %v75_v41  ;;  %v825_v1 = vld [vmem:[#allocation5 + $0x60] sm:$0xff]  ;;  %v824_v8 = vld [vmem:[#allocation5 + $0x58] sm:$0xff]  ;;  %v823_v10 = vld [vmem:[#allocation5 + $0x50] sm:$0xff] }
  0x1d   :  { %386 = vmatpush.bf16.msrb.mxu1 %v820_v39  ;;  %399 = vmatpush.bf16.msrb.mxu3 %v828_v40  ;;  %v813_v11 = vld [vmem:[#allocation5] sm:$0xff]  ;;  %v822_v12 = vld [vmem:[#allocation5 + $0x48] sm:$0xff]  ;;  %v836_v14 = vld [vmem:[%s1080_s5 + $0x38] sm:$0xff] }
  0x1e   :  { %673 = vmatmul.msk.bf16.vlgmr.msra.gmra.mxu1 %vm184_vm2, %v75_v41  ;;  %v821_v13 = vld [vmem:[#allocation5 + $0x40] sm:$0xff]  ;;  %v835_v16 = vld [vmem:[%s1080_s5 + $0x30] sm:$0xff]  ;;  %v833_v20 = vld [vmem:[%s1080_s5 + $0x20] sm:$0xff] }
  0x1f   :  { %228 = vmatpush.bf16.msra.mxu2 %v640_v42  ;;  %v834_v17 = vld [vmem:[%s1080_s5 + $0x28] sm:$0xff]  ;;  %v93_v21 = vld [vmem:[%s1077_s2] sm:$0x3]  ;;  %v832_v37 = vld [vmem:[%s1080_s5 + $0x18] sm:$0xff]  ;;  %s596_s2 = sshll.u32 %s940_s23, 4  ;;  %s597_s2 = int_to_ptr.vmem [resolvable:$true] %s596_s2 }
  0x20   :  { %202 = vmatpush.bf16.msra.mxu0 %v636_v43  ;;  %v95_v22 = vperm.slane %v93_v21, 0  ;;  %v96_v26 = vperm.slane %v93_v21, 1  ;;  %v831_v38 = vld [vmem:[%s1080_s5 + $0x10] sm:$0xff]  ;;  %v830_v39 = vld [vmem:[%s1080_s5 + $0x8] sm:$0xff]  ;;  %v829_v40 = vld [vmem:[%s1080_s5] sm:$0xff] }
  0x21   :  { %387 = vmatpush.bf16.msrb.mxu1 %v819_v48  ;;  %400 = vmatpush.bf16.msrb.mxu3 %v827_v49  ;;  %v840_v41 = vld [vmem:[%s1082_s7 + $0x18] sm:$0xff]  ;;  %v839_v42 = vld [vmem:[%s1082_s7 + $0x10] sm:$0xff]  ;;  %v838_v43 = vld [vmem:[%s1082_s7 + $0x8] sm:$0xff] }
  0x22   :  { %v851_v45 = vld [vmem:[%s1079_s4] ss:$0 sm:$0xff]  ;;  %v842_v54 = vld [vmem:[%s1084_s9 + $0x8] sm:$0xff] }
  0x23   :  { %229 = vmatpush.bf16.msra.mxu2 %v632_v50  ;;  %v837_v53 = vld [vmem:[%s1082_s7] sm:$0xff] }
  0x24   :  { %203 = vmatpush.bf16.msra.mxu0 %v628_v51  ;;  %v841_v55 = vld [vmem:[%s1084_s9] sm:$0xff] }
  0x25   :  { %388 = vmatpush.bf16.msrb.mxu1 %v818_v56  ;;  %401 = vmatpush.bf16.msrb.mxu3 %v826_v57  ;;  %v852_v56 = vld [vmem:[%s1081_s6] ss:$0 sm:$0xff] }
  0x26   :  { %v853_v62 = vld [vmem:[%s1083_s8] ss:$0 sm:$0xff] }
  0x27   :  { %230 = vmatpush.bf16.msra.mxu2 %v624_v58 }
  0x28   :  { %204 = vmatpush.bf16.msra.mxu0 %v620_v59 }
  0x29   :  { %389 = vmatpush.bf16.msrb.mxu1 %v817_v0  ;;  %402 = vmatpush.bf16.msrb.mxu3 %v825_v1 }
  0x2b   :  { %231 = vmatpush.bf16.msra.mxu2 %v616_v2 }
  0x2c   :  { %205 = vmatpush.bf16.msra.mxu0 %v612_v4  ;;  %v854_v4 = vld [vmem:[%s1085_s10] ss:$0 sm:$0xff] }
  0x2d   :  { %390 = vmatpush.bf16.msrb.mxu1 %v816_v5  ;;  %403 = vmatpush.bf16.msrb.mxu3 %v824_v8 }
  0x2e   :  { %232 = vmatmul.bf16.vlgmr.msra.gmra.mxu2 %v74_v6 }
  0x2f   :  { %206 = vmatmul.bf16.vlgmr.msra.gmra.mxu0 %v74_v6  ;;  %541 = vmatpush.bf16.msrb.mxu2 %v840_v41 }
  0x30   :  { %482 = vmatpush.bf16.msrb.mxu0 %v836_v14 }
  0x31   :  { %391 = vmatpush.bf16.msrb.mxu1 %v815_v7  ;;  %404 = vmatpush.bf16.msrb.mxu3 %v823_v10 }
  0x33   :  { %542 = vmatpush.bf16.msrb.mxu2 %v839_v42 }
  0x34   :  { %483 = vmatpush.bf16.msrb.mxu0 %v835_v16 }
  0x35   :  { %392 = vmatpush.bf16.msrb.mxu1 %v814_v9  ;;  %405 = vmatpush.bf16.msrb.mxu3 %v822_v12 }
  0x37   :  { %543 = vmatpush.bf16.msrb.mxu2 %v838_v43 }
  0x38   :  { %484 = vmatpush.bf16.msrb.mxu0 %v834_v17 }
  0x39   :  { %393 = vmatpush.bf16.msrb.mxu1 %v813_v11  ;;  %406 = vmatpush.bf16.msrb.mxu3 %v821_v13 }
  0x3b   :  { %544 = vmatpush.bf16.msrb.mxu2 %v837_v53 }
  0x3c   :  { %485 = vmatpush.bf16.msrb.mxu0 %v833_v20 }
  0x3d   :  { %582 = vmatpush.bf16.msra.mxu1 %v842_v54 }
  0x40   :  { %486 = vmatpush.bf16.msrb.mxu0 %v832_v37 }
  0x41   :  { %583 = vmatpush.bf16.msra.mxu1 %v841_v55 }
  0x44   :  { %487 = vmatpush.bf16.msrb.mxu0 %v831_v38 }
  0x48   :  { %488 = vmatpush.bf16.msrb.mxu0 %v830_v39 }
  0x4c   :  { %489 = vmatpush.bf16.msrb.mxu0 %v829_v40 }
  0x9b   :  { %v220_v15 = vpop.f32.mrf.mxu1 }
  0x9f   :  { %v246_v18 = vpop.f32.mrf.mxu3 }
  0xa3   :  { %v222_v19 = vpop.f32.mrf.mxu1 }
  0xa7   :  { %v248_v23 = vpop.f32.mrf.mxu3 }
  0xac   :  { %v207_v24 = vpop.f32.mrf.mxu0 }
  0xad   :  { %v208_v25 = vadd.f32 %v207_v24, %v95_v22 }
  0xaf   :  { %v221_v27 = vadd.f32 %v220_v15, %v208_v25 }
  0xb1   :  { %v250_v28 = vmax.f32 %v221_v27, 0.0  ;;  %v233_v29 = vpop.f32.mrf.mxu2 }
  0xb2   :  { %v234_v30 = vadd.f32 %v233_v29, %v96_v26 }
  0xb3   :  { %v252_v31 = vpack.c.bf16 %v250_v28, %v250_v28 }
  0xb4   :  { %v247_v32 = vadd.f32 %v246_v18, %v234_v30  ;;  %v209_v33 = vpop.f32.mrf.mxu0 }
  0xb5   :  { %394 = vmatmul.bf16.vlgmr.msrb.gmra.mxu1 %v252_v31 }
  0xb6   :  { %v251_v34 = vmax.f32 %v247_v32, 0.0 }
  0xb8   :  { %v253_v35 = vpack.c.bf16 %v251_v34, %v251_v34 }
  0xb9   :  { %v235_v36 = vpop.f32.mrf.mxu2 }
  0xba   :  { %407 = vmatmul.bf16.vlgmr.msrb.gmra.mxu3 %v253_v35 }
 0x132   :  { %v395_v44 = vpop.f32.mrf.mxu1 }
 0x133   :  { %v396_v46 = vadd.f32 %v851_v45, %v395_v44 }
 0x13a   :  { %v397_v47 = vpop.f32.mrf.mxu1 }
 0x13d   :  { %v408_v48 = vpop.f32.mrf.mxu3 }
 0x13e   :  { %v409_v49 = vadd.f32 %v408_v48, %v396_v46 }
 0x140   :  { %v412_v50 = vmax.f32 %v409_v49, 0.0 }
 0x142   :  { %v413_v51 = vpack.c.bf16 %v412_v50, %v412_v50 }
 0x144   :  { %490 = vmatmul.bf16.vlgmr.msrb.gmra.mxu0 %v413_v51 }
 0x145   :  { %v410_v52 = vpop.f32.mrf.mxu3 }
 0x1c1   :  { %v491_v57 = vpop.f32.mrf.mxu0 }
 0x1c2   :  { %v492_v58 = vadd.f32 %v852_v56, %v491_v57 }
 0x1c4   :  { %v495_v59 = vmax.f32 %v492_v58, 0.0 }
 0x1c6   :  { %v496_v60 = vpack.c.bf16 %v495_v59, %v495_v59 }
 0x1c8   :  { %787 = vmatmul.msk.bf16.vlgmr.msrb.gmra.mxu2 %vm533_vm3, %v496_v60 }
 0x1c9   :  { %v493_v61 = vpop.f32.mrf.mxu0 }
 0x24b   :  { %v546_v63 = vpop.f32.mrf.mxu2 }
 0x24c   :  { %v547_v0 = vadd.f32 %v853_v62, %v546_v63 }
 0x24e   :  { %v550_v1 = vmax.f32 %v547_v0, 0.0 }
 0x250   :  { %v551_v2 = vpack.c.bf16 %v550_v1, %v550_v1 }
 0x252   :  { %796 = vmatmul.msk.bf16.vlgmr.msra.gmra.mxu1 %vm572_vm4, %v551_v2 }
 0x253   :  { %v548_v3 = vpop.f32.mrf.mxu2 }
 0x2cf   :  { %v585_v5 = vpop.f32.mrf.mxu1 }
 0x2d0   :  { %v586_v6 = vadd.f32 %v854_v4, %v585_v5 }
 0x2d2   :  { %590 = vst.msk [vmem:[#allocation7] sm:$0xff] %vm589_vm5, %v586_v6 }
 0x2d3   :  { %601 = dma.vmem_to_hbm [thread:$0]  %s597_s2, 128, %s599_s26, [#allocation4]  }
 0x2d7   :  { %v587_v7 = vpop.f32.mrf.mxu1 }
 0x2d8   :  { %931 = dma.done.wait [#allocation4], 128  }
 0x2d9   :  { %932 = vsyncadd [#allocation4], 4294967168 }
 0x2da   :  { %606 = vsyncpa [#allocation3], 1 }
 0x2db   :  { %607 = vsyncpa [#allocation6], 1 }
 0x2dc   :  { %608 = vsyncpa [#allocation4], 1 }

</bundles_post_ra>
